<compile_context>
chip_gen: v7x
topology: tpu7x:2x2x1
jax: 0.10.0
libtpu: 0.0.40
codegen_flags: <defaults>
</compile_context>

<pallas_src>
import functools

import jax
import jax.numpy as jnp
from jax.experimental import pallas as pl
from jax.experimental.pallas import tpu as pltpu

_LANE = 1024            # lane-dense last dim (multiple of 128) -> unmasked stores
_MAX_BLOCK_ROWS = 512   # (512, 1024) f32 = 2 MiB / tile


def _linreg_kernel(wb_ref, x_ref, o_ref):
    # wb_ref : SMEM f32[2] = [weight, bias]
    # x_ref  : VMEM tile (block_rows, _LANE)
    # o_ref  : VMEM tile (block_rows, _LANE)  (aliases x's HBM buffer)
    w = wb_ref[0]
    b = wb_ref[1]
    o_ref[...] = w * x_ref[...] + b


@functools.partial(jax.jit, static_argnames=("max_block_rows",))
def linear_regression_forward(x, weights, bias, *, max_block_rows=_MAX_BLOCK_ROWS):
    """y = weights * x + bias with weights/bias of shape (1,) (PyTorch broadcast)."""
    orig_shape = x.shape

    # Flatten to 1-D, pad to a whole number of (block_rows, _LANE) tiles.
    xf = jnp.ravel(x).astype(jnp.float32)
    n = xf.shape[0]

    rows = pl.cdiv(n, _LANE)
    block_rows = min(max_block_rows, ((rows + 7) // 8) * 8)   # multiple of 8 sublanes
    block_rows = max(8, (block_rows // 8) * 8)
    rows_padded = pl.cdiv(rows, block_rows) * block_rows
    n_padded = rows_padded * _LANE

    if n_padded != n:
        xf = jnp.pad(xf, (0, n_padded - n))
    x2d = xf.reshape(rows_padded, _LANE)

    # Pack the two scalar parameters into one tiny SMEM operand.
    wb = jnp.concatenate(
        [jnp.ravel(weights), jnp.ravel(bias)]).astype(jnp.float32)   # f32[2]

    grid = (rows_padded // block_rows,)

    out2d = pl.pallas_call(
        _linreg_kernel,
        out_shape=jax.ShapeDtypeStruct((rows_padded, _LANE), jnp.float32),
        grid_spec=pl.GridSpec(
            grid=grid,
            in_specs=[
                pl.BlockSpec(memory_space=pltpu.SMEM),                 # [w, b]
                pl.BlockSpec((block_rows, _LANE), lambda i: (i, 0)),   # x tile
            ],
            out_specs=pl.BlockSpec((block_rows, _LANE), lambda i: (i, 0)),
        ),
        compiler_params=pltpu.CompilerParams(
            dimension_semantics=("parallel",),        # shard rows across v7x's 2 TCs
            vmem_limit_bytes=32 * 1024 * 1024,        # headroom; <= v7x physical
        ),
        cost_estimate=pl.CostEstimate(
            flops=2 * n_padded,
            transcendentals=0,
            bytes_accessed=8 * n_padded,
        ),
        input_output_aliases={1: 0},                  # in-place on the padded slab
    )(wb, x2d)

    return out2d.reshape(-1)[:n].reshape(orig_shape)


if __name__ == "__main__":
    key = jax.random.PRNGKey(0)
    k_w, k_b, k_x1, k_x2 = jax.random.split(key, 4)

    # Parameters matching nn.Parameter(torch.randn(1)) shapes.
    weights = jax.random.normal(k_w, (1,), dtype=jnp.float32)
    bias = jax.random.normal(k_b, (1,), dtype=jnp.float32)

    # Test 1: tiny, ragged input -> exercises flatten + pad path (grid = 1).
    x1 = jax.random.normal(k_x1, (7, 100), dtype=jnp.float32)
    y1 = jax.block_until_ready(linear_regression_forward(x1, weights, bias))
    ref1 = weights * x1 + bias
    assert y1.shape == x1.shape and y1.dtype == jnp.float32
    assert jnp.allclose(y1, ref1, atol=1e-6, rtol=1e-6)

    # Test 2: force several grid steps (block_rows=8 -> grid of 4) to verify the
    # row-tiled index_map and "parallel" axis.
    x2 = jax.random.normal(k_x2, (32, 1024), dtype=jnp.float32)
    y2 = jax.block_until_ready(
        linear_regression_forward(x2, weights, bias, max_block_rows=8))
    ref2 = weights * x2 + bias
    assert y2.shape == x2.shape and y2.dtype == jnp.float32
    assert jnp.allclose(y2, ref2, atol=1e-6, rtol=1e-6)

    print("KERNEL_OK")
</pallas_src>

<mosaic_0001>
module attributes {stable_mosaic.version = 11 : i64} {
  func.func @_linreg_kernel(%arg0: i32, %arg1: memref<2xf32, #tpu.memory_space<smem>>, %arg2: memref<8x1024xf32, #tpu.memory_space<vmem>>, %arg3: memref<8x1024xf32, #tpu.memory_space<vmem>>) attributes {dimension_semantics = [#tpu.dimension_semantics<parallel>], iteration_bounds = array<i64: 1>, scalar_prefetch = 0 : i64, scratch_operands = 0 : i64, tpu.core_type = #tpu.core_type<tc>, window_params = [{transform_indices = @transform_0, window_bounds = array<i64: 2>}, {transform_indices = @transform_1, window_bounds = array<i64: 8, 1024>}, {transform_indices = @transform_2, window_bounds = array<i64: 8, 1024>}]} {
    %c0 = arith.constant 0 : index
    %0 = memref.load %arg1[%c0] : memref<2xf32, #tpu.memory_space<smem>>
    %c1 = arith.constant 1 : index
    %1 = memref.load %arg1[%c1] : memref<2xf32, #tpu.memory_space<smem>>
    %c0_0 = arith.constant 0 : index
    %c0_1 = arith.constant 0 : index
    %2 = vector.load %arg2[%c0_0, %c0_1] : memref<8x1024xf32, #tpu.memory_space<vmem>>, vector<8x1024xf32>
    %3 = vector.broadcast %0 : f32 to vector<8x1024xf32>
    %4 = arith.mulf %3, %2 : vector<8x1024xf32>
    %5 = vector.broadcast %1 : f32 to vector<8x1024xf32>
    %6 = arith.addf %4, %5 : vector<8x1024xf32>
    %c0_2 = arith.constant 0 : index
    %c0_3 = arith.constant 0 : index
    %7 = vector.load %arg3[%c0_2, %c0_3] : memref<8x1024xf32, #tpu.memory_space<vmem>>, vector<8x1024xf32>
    tpu.vector_store %arg3[%c0_2, %c0_3], %6 {strides = array<i32>} : memref<8x1024xf32, #tpu.memory_space<vmem>>, vector<8x1024xf32>,
    return
  }
  func.func @transform_0(%arg0: i32) -> i32 {
    %c0_i32 = arith.constant 0 : i32
    %c0_i32_0 = arith.constant 0 : i32
    return %c0_i32 : i32
  }
  func.func @transform_1(%arg0: i32) -> (i32, i32) {
    %c0_i32 = arith.constant 0 : i32
    %c0_i32_0 = arith.constant 0 : i32
    return %arg0, %c0_i32 : i32, i32
  }
  func.func @transform_2(%arg0: i32) -> (i32, i32) {
    %c0_i32 = arith.constant 0 : i32
    %c0_i32_0 = arith.constant 0 : i32
    return %arg0, %c0_i32 : i32, i32
  }
}

</mosaic_0001>

<bundles_post_ra>
// kernel: linear_regression_forward.1
= control target key start
LH: loop header
LB: loop body
LE: loop exit
PB: predicated region body
PF: predicated region fallthrough
CT: control target
= control target key end

     0   :  { %7 = vsyncpa [#allocation3], 0  ;;  %s148_s0 = inlined_call_operand.vmem [shape: f32[2], index: 0, kind: input, shape index: {}]   ;;  %s149_s1 = inlined_call_operand.vmem [shape: f32[8,1024], index: 1, kind: input, shape index: {}, may-alias: {1,2}]   ;;  %s150_s2 = inlined_call_operand.vmem [shape: f32[8,1024], index: 2, kind: output, shape index: {}, may-alias: {1,2}]  }
   0x1   :  { %s14_s11 = sshll.u32 %s148_s0, 4  ;;  %s15_s11 = int_to_ptr.vmem [resolvable:$true] %s14_s11 }
   0x2   :  { %s67_s12 = scalar_lea.vmem %s15_s11, 16  ;;  %p72_p1 = scmp.lt.s32.totalorder %s15_s11, %s15_s11 }
   0x3   :  { %p68_p0 = scmp.ne.s32.totalorder %s15_s11, %s67_s12  ;;  %p73_p2 = scmp.lt.s32.totalorder %s67_s12, %s67_s12 }
   0x5   :  { %p74_p3 = por %p73_p2, %p72_p1 }
   0x7   :  { %p75_p4 = pnand %p74_p3, %p68_p0 }
   0x9   :  { %78 = shalt.err (!%p75_p4)
}
   0xa   :  { %s81_s13 = smov [#allocation2]  }
   0xb   :  { %17 = dma.vmem_to_smem %s15_s11, 16, %s81_s13, [#allocation3]  }
   0xc   :  { %79 = dma.done.wait [#allocation3], 16  }
   0xd   :  { %80 = vsyncadd [#allocation3], 4294967280 }
   0xe   :  { %23 = sfence }
   0xf   :  { %s24_s14 = sld [smem:[#allocation2]]  ;;  %s65_s15 = sld [smem:[#allocation2 + $0x1]]  ;;  %v26_v0 = vld [vmem:[%s149_s1] sm:$0xff]  ;;  %v27_v1 = vld [vmem:[%s149_s1 + $0x8] sm:$0xff]  ;;  %v28_v2 = vld [vmem:[%s149_s1 + $0x10] sm:$0xff] }
  0x10   :  { %v29_v3 = vld [vmem:[%s149_s1 + $0x18] sm:$0xff]  ;;  %v30_v4 = vld [vmem:[%s149_s1 + $0x20] sm:$0xff]  ;;  %v31_v5 = vld [vmem:[%s149_s1 + $0x28] sm:$0xff] }
  0x11   :  { %v32_v6 = vld [vmem:[%s149_s1 + $0x30] sm:$0xff]  ;;  %v33_v7 = vld [vmem:[%s149_s1 + $0x38] sm:$0xff] }
  0x15   :  { %v34_v8 = vstv %s24_s14  ;;  %v43_v9 = vstv %s65_s15 }
  0x16   :  { %v35_v10 = vmul.f32 %v34_v8, %v26_v0  ;;  %v36_v11 = vmul.f32 %v34_v8, %v27_v1  ;;  %v37_v12 = vmul.f32 %v34_v8, %v28_v2  ;;  %v38_v13 = vmul.f32 %v34_v8, %v29_v3 }
  0x17   :  { %v39_v14 = vmul.f32 %v34_v8, %v30_v4  ;;  %v40_v15 = vmul.f32 %v34_v8, %v31_v5  ;;  %v41_v16 = vmul.f32 %v34_v8, %v32_v6  ;;  %v42_v17 = vmul.f32 %v34_v8, %v33_v7 }
  0x18   :  { %v44_v18 = vadd.f32 %v43_v9, %v35_v10  ;;  %v45_v19 = vadd.f32 %v43_v9, %v36_v11  ;;  %v46_v20 = vadd.f32 %v43_v9, %v37_v12  ;;  %v47_v21 = vadd.f32 %v43_v9, %v38_v13 }
  0x19   :  { %v48_v22 = vadd.f32 %v43_v9, %v39_v14  ;;  %v49_v23 = vadd.f32 %v43_v9, %v40_v15  ;;  %v50_v24 = vadd.f32 %v43_v9, %v41_v16  ;;  %v51_v25 = vadd.f32 %v43_v9, %v42_v17 }
  0x1a   :  { %52 = vst [vmem:[%s150_s2] sm:$0xff] %v44_v18  ;;  %53 = vst [vmem:[%s150_s2 + $0x8] sm:$0xff] %v45_v19 }
  0x1b   :  { %54 = vst [vmem:[%s150_s2 + $0x10] sm:$0xff] %v46_v20  ;;  %55 = vst [vmem:[%s150_s2 + $0x18] sm:$0xff] %v47_v21 }
  0x1c   :  { %56 = vst [vmem:[%s150_s2 + $0x20] sm:$0xff] %v48_v22  ;;  %57 = vst [vmem:[%s150_s2 + $0x28] sm:$0xff] %v49_v23 }
  0x1d   :  { %58 = vst [vmem:[%s150_s2 + $0x30] sm:$0xff] %v50_v24  ;;  %59 = vst [vmem:[%s150_s2 + $0x38] sm:$0xff] %v51_v25 }
  0x1e   :  { %64 = vsyncpa [#allocation3], 1 }

</bundles_post_ra>
